<compile_context>
chip_gen: v6e
topology: v6e:2x2x1
jax: 0.10.0
libtpu: 0.0.40
codegen_flags: <defaults>
</compile_context>

<pallas_src>
import jax
import jax.numpy as jnp
from jax.experimental import pallas as pl
from jax.experimental.pallas import tpu as pltpu


def _round_up(a: int, b: int) -> int:
    return ((a + b - 1) // b) * b


# ------------------------------- kernels ------------------------------------

def ffn_kernel_resident(x_ref, w1_ref, b1_ref, w2_ref, b2_ref, o_ref):
    # Per grid step i:
    #   x_ref : (tm, d_model)    w1_ref: (d_model, d_ff)   b1_ref: (1, d_ff)
    #   w2_ref: (d_ff, d_model)  b2_ref: (1, d_model)      o_ref : (tm, d_model)
    # Whole FFN in one shot: no accumulator scratch, no zero-init, no RMW.
    h = jnp.dot(x_ref[...], w1_ref[...], preferred_element_type=jnp.float32)
    h = jnp.maximum(h + b1_ref[...], 0.0)
    y = jnp.dot(h.astype(w2_ref.dtype), w2_ref[...],
                preferred_element_type=jnp.float32)
    o_ref[...] = (y + b2_ref[...]).astype(o_ref.dtype)


def ffn_kernel_streaming(x_ref, w1_ref, b1_ref, w2_ref, b2_ref, o_ref, acc_ref):
    # Grid (i, k): k streams lane-aligned d_ff slices; the f32 accumulator
    # carries the partial second matmul across k.  ReLU is elementwise along
    # d_ff, so sum_k relu(x @ W1[:, k] + b1[k]) @ W2[k, :] equals the unfused
    # result exactly.
    k = pl.program_id(1)

    @pl.when(k == 0)
    def _init():
        acc_ref[...] = jnp.zeros_like(acc_ref)

    h = jnp.dot(x_ref[...], w1_ref[...], preferred_element_type=jnp.float32)
    h = jnp.maximum(h + b1_ref[...], 0.0)
    acc_ref[...] += jnp.dot(h.astype(w2_ref.dtype), w2_ref[...],
                            preferred_element_type=jnp.float32)

    @pl.when(k == pl.num_programs(1) - 1)
    def _finalize():
        o_ref[...] = (acc_ref[...] + b2_ref[...]).astype(o_ref.dtype)


# ----------------------------- configuration --------------------------------

def _vmem_limit_bytes() -> int:
    """~80% of physical per-core VMEM (51 MiB v7x, ~102 MiB v5e/v6e)."""
    try:
        cap = int(pltpu.get_tpu_info().vmem_capacity_bytes)
    except Exception:
        cap = 64 << 20  # conservative: v7x physical VMEM per TensorCore
    return int(cap * 0.8)


def _dff_slice_candidates(d_ff: int):
    """Lane-aligned exact divisors of d_ff (prefer 256-aligned), descending."""
    div128 = [d for d in range(128, d_ff + 1, 128) if d_ff % d == 0]
    div256 = [d for d in div128 if d % 256 == 0]
    return sorted(div256 if div256 else div128, reverse=True)


def _vmem_estimate(tm, tf, d_model, act_bytes, wt_bytes, streaming) -> int:
    """Rough scoped-VMEM footprint (default double-buffering assumed)."""
    weights = 2 * (d_model * tf + tf * d_model + 8 * tf) * wt_bytes  # W1, W2, b1
    b2 = 2 * 8 * d_model * wt_bytes
    io = 2 * tm * d_model * act_bytes * 2          # x + out tiles (2 bufs each)
    h = tm * tf * (4 + wt_bytes)                   # f32 h + cast for 2nd matmul
    acc = tm * d_model * 4 if streaming else 0     # f32 accumulator scratch
    return int(1.25 * (weights + b2 + io + h + acc))


def _choose_tiling(M, d_model, d_ff, act_bytes, wt_bytes, vmem_limit, tm, tf):
    """Return (tm_eff, tf_eff); tf_eff always divides d_ff exactly."""
    row_mult = 8 if act_bytes >= 4 else (16 if act_bytes == 2 else 32)

    def clamp_rows(t):
        return max(row_mult, min(t, _round_up(M, row_mult)))

    # Explicit streaming request (manual tuning / tests).
    if tf is not None and 0 < tf < d_ff and d_ff % tf == 0 and tf % 128 == 0:
        tm_target = tm if tm is not None else (512 if wt_bytes <= 2 else 1024)
        return clamp_rows(tm_target), tf

    # Preferred: weights fully resident (num_k == 1).
    tm_res = clamp_rows(tm if tm is not None else 256)
    if _vmem_estimate(tm_res, d_ff, d_model, act_bytes, wt_bytes,
                      streaming=False) <= vmem_limit:
        return tm_res, d_ff

    # Streaming: large row tiles to amortize weight re-streaming; lane-aligned
    # slices that divide d_ff exactly (no weight padding).
    tf_cands = _dff_slice_candidates(d_ff)
    if not tf_cands:
        return tm_res, d_ff  # d_ff not 128-aligned: keep it whole
    tm_target = tm if tm is not None else (512 if wt_bytes <= 2 else 1024)
    tm_cands = sorted({t for t in (tm_target, 768, 512, 384, 256, 128)
                       if t <= tm_target}, reverse=True)
    for tm_c in tm_cands:
        tm_c = clamp_rows(tm_c)
        for tf_c in tf_cands:
            if _vmem_estimate(tm_c, tf_c, d_model, act_bytes, wt_bytes,
                              streaming=True) <= vmem_limit:
                return tm_c, tf_c
    return clamp_rows(128), tf_cands[-1]


# ------------------------------- wrapper -------------------------------------

def position_wise_feed_forward(x, w1, b1, w2, b2, *, tm=None, tf=None):
    """y = relu(x @ w1 + b1) @ w2 + b2 fused in one Pallas TPU kernel.

    x: (B, S, d_model); w1: (d_model, d_ff); b1: (d_ff,);
    w2: (d_ff, d_model); b2: (d_model,).  Weights are (in_features,
    out_features), i.e. nn.Linear.weight transposed.  Returns x.dtype.
    """
    B, S, d_model = x.shape
    d_ff = w1.shape[1]
    M = B * S
    act_bytes = x.dtype.itemsize
    wt_bytes = w1.dtype.itemsize

    vmem_limit = _vmem_limit_bytes()
    tm_eff, tf_eff = _choose_tiling(M, d_model, d_ff, act_bytes, wt_bytes,
                                    vmem_limit, tm, tf)
    num_rows = pl.cdiv(M, tm_eff)
    num_k = d_ff // tf_eff

    # No activation/weight padding, no output slicing: trailing partial row
    # blocks are clipped by Pallas on store, and rows are independent so the
    # garbage rows of the last input block never touch valid output.
    x2d = x.reshape(M, d_model)
    b1_2d = b1.reshape(1, d_ff)
    b2_2d = b2.reshape(1, d_model)

    weight_bytes = (2 * d_model * d_ff + d_ff + d_model) * wt_bytes
    cost = pl.CostEstimate(
        flops=4 * M * d_model * d_ff,
        transcendentals=0,
        bytes_accessed=(2 * M * d_model * act_bytes
                        + (1 if num_k == 1 else num_rows) * weight_bytes))

    if num_k == 1:
        grid_spec = pltpu.PrefetchScalarGridSpec(
            num_scalar_prefetch=0,
            grid=(num_rows,),
            in_specs=[
                pl.BlockSpec((tm_eff, d_model), lambda i: (i, 0)),   # x rows
                pl.BlockSpec((d_model, d_ff), lambda i: (0, 0)),     # W1
                pl.BlockSpec((1, d_ff), lambda i: (0, 0)),           # b1
                pl.BlockSpec((d_ff, d_model), lambda i: (0, 0)),     # W2
                pl.BlockSpec((1, d_model), lambda i: (0, 0)),        # b2
            ],
            out_specs=pl.BlockSpec((tm_eff, d_model), lambda i: (i, 0)),
        )
        kernel = ffn_kernel_resident
        dim_sem = ("parallel",)
    else:
        grid_spec = pltpu.PrefetchScalarGridSpec(
            num_scalar_prefetch=0,
            grid=(num_rows, num_k),
            in_specs=[
                pl.BlockSpec((tm_eff, d_model), lambda i, k: (i, 0)),  # x rows
                pl.BlockSpec((d_model, tf_eff), lambda i, k: (0, k)),  # W1 slice
                pl.BlockSpec((1, tf_eff), lambda i, k: (0, k)),        # b1 slice
                pl.BlockSpec((tf_eff, d_model), lambda i, k: (k, 0)),  # W2 slice
                pl.BlockSpec((1, d_model), lambda i, k: (0, 0)),       # b2
            ],
            out_specs=pl.BlockSpec((tm_eff, d_model), lambda i, k: (i, 0)),
            scratch_shapes=[pltpu.VMEM((tm_eff, d_model), jnp.float32)],
        )
        kernel = ffn_kernel_streaming
        dim_sem = ("parallel", "arbitrary")

    out2d = pl.pallas_call(
        kernel,
        out_shape=jax.ShapeDtypeStruct((M, d_model), x.dtype),
        grid_spec=grid_spec,
        compiler_params=pltpu.CompilerParams(
            dimension_semantics=dim_sem,
            vmem_limit_bytes=vmem_limit),
        cost_estimate=cost,
    )(x2d, w1, b1_2d, w2, b2_2d)

    return out2d.reshape(B, S, d_model)


# ------------------------------ params / ref ---------------------------------

def init_params(key, d_model, d_ff, dtype=jnp.float32):
    """nn.Linear-style uniform(+/- 1/sqrt(fan_in)) init; weights stored
    transposed as (in_features, out_features)."""
    k1, k2, k3, k4 = jax.random.split(key, 4)
    bound1 = 1.0 / jnp.sqrt(d_model)
    bound2 = 1.0 / jnp.sqrt(d_ff)
    w1 = jax.random.uniform(k1, (d_model, d_ff), dtype, -bound1, bound1)
    b1 = jax.random.uniform(k2, (d_ff,), dtype, -bound1, bound1)
    w2 = jax.random.uniform(k3, (d_ff, d_model), dtype, -bound2, bound2)
    b2 = jax.random.uniform(k4, (d_model,), dtype, -bound2, bound2)
    return w1, b1, w2, b2


def _reference(x, w1, b1, w2, b2):
    return jnp.maximum(x @ w1 + b1, 0.0) @ w2 + b2


if __name__ == "__main__":
    key = jax.random.PRNGKey(0)
    kx1, kp1, kx2, kp2 = jax.random.split(key, 4)

    # --- Test 1: small f32, resident-weight path (no accumulator) -----------
    B, S, d_model, d_ff = 2, 8, 32, 64
    x = jax.random.normal(kx1, (B, S, d_model), dtype=jnp.float32)
    w1, b1, w2, b2 = init_params(kp1, d_model, d_ff)
    y = jax.block_until_ready(position_wise_feed_forward(x, w1, b1, w2, b2))
    y_ref = _reference(x, w1, b1, w2, b2)
    assert y.shape == (B, S, d_model)
    assert jnp.allclose(y, y_ref, atol=1e-5, rtol=1e-5), "f32 resident mismatch"

    # --- Test 2: ragged rows (M=15, clipped trailing block) + forced d_ff
    #             streaming (num_k=2) exercising the accumulator kernel ------
    B2, S2, d_model2, d_ff2 = 3, 5, 32, 256
    x2 = jax.random.normal(kx2, (B2, S2, d_model2), dtype=jnp.float32)
    p2 = init_params(kp2, d_model2, d_ff2)
    y2 = jax.block_until_ready(position_wise_feed_forward(x2, *p2, tf=128))
    y2_ref = _reference(x2, *p2)
    assert y2.shape == (B2, S2, d_model2)
    assert jnp.allclose(y2, y2_ref, atol=1e-4, rtol=1e-4), "streaming mismatch"

    # --- Test 3: bf16 end-to-end (native-dtype MXU operands) ----------------
    xb = x.astype(jnp.bfloat16)
    wb = tuple(p.astype(jnp.bfloat16) for p in (w1, b1, w2, b2))
    y3 = jax.block_until_ready(position_wise_feed_forward(xb, *wb))
    y3_ref = _reference(xb.astype(jnp.float32),
                        *(p.astype(jnp.float32) for p in wb))
    assert y3.dtype == jnp.bfloat16
    assert jnp.allclose(y3.astype(jnp.float32), y3_ref, atol=5e-2, rtol=5e-2), \
        "bf16 mismatch"

    print("KERNEL_OK")
</pallas_src>

<mosaic_0001>
module attributes {stable_mosaic.version = 11 : i64} {
  func.func @ffn_kernel_resident(%arg0: i32, %arg1: memref<16x32xf32, #tpu.memory_space<vmem>>, %arg2: memref<32x64xf32, #tpu.memory_space<vmem>>, %arg3: memref<1x64xf32, #tpu.memory_space<vmem>>, %arg4: memref<64x32xf32, #tpu.memory_space<vmem>>, %arg5: memref<1x32xf32, #tpu.memory_space<vmem>>, %arg6: memref<16x32xf32, #tpu.memory_space<vmem>>) attributes {dimension_semantics = [#tpu.dimension_semantics<parallel>], iteration_bounds = array<i64: 1>, scalar_prefetch = 0 : i64, scratch_operands = 0 : i64, tpu.core_type = #tpu.core_type<tc>, window_params = [{transform_indices = @transform_0, window_bounds = array<i64: 16, 32>}, {pipeline_mode = #tpu.pipeline_mode<synchronous>, transform_indices = @transform_1, window_bounds = array<i64: 32, 64>}, {pipeline_mode = #tpu.pipeline_mode<synchronous>, transform_indices = @transform_2, window_bounds = array<i64: 1, 64>}, {pipeline_mode = #tpu.pipeline_mode<synchronous>, transform_indices = @transform_3, window_bounds = array<i64: 64, 32>}, {pipeline_mode = #tpu.pipeline_mode<synchronous>, transform_indices = @transform_4, window_bounds = array<i64: 1, 32>}, {transform_indices = @transform_5, window_bounds = array<i64: 16, 32>}]} {
    %c0 = arith.constant 0 : index
    %c0_0 = arith.constant 0 : index
    %0 = vector.load %arg1[%c0, %c0_0] : memref<16x32xf32, #tpu.memory_space<vmem>>, vector<16x32xf32>
    %c0_1 = arith.constant 0 : index
    %c0_2 = arith.constant 0 : index
    %1 = vector.load %arg2[%c0_1, %c0_2] : memref<32x64xf32, #tpu.memory_space<vmem>>, vector<32x64xf32>
    %cst = arith.constant dense<0.000000e+00> : vector<16x64xf32>
    %2 = tpu.matmul %0, %1, %cst {dimension_numbers = #tpu.dot_dimension_numbers<[1], [0], [0], [1], [0, 0, 1, 1], [], []>} : vector<16x32xf32>, vector<32x64xf32>, vector<16x64xf32> -> vector<16x64xf32>
    %c0_3 = arith.constant 0 : index
    %c0_4 = arith.constant 0 : index
    %3 = vector.load %arg3[%c0_3, %c0_4] : memref<1x64xf32, #tpu.memory_space<vmem>>, vector<1x64xf32>
    %4 = vector.broadcast %3 : vector<1x64xf32> to vector<16x64xf32>
    %5 = arith.addf %2, %4 : vector<16x64xf32>
    %cst_5 = arith.constant 0.000000e+00 : f32
    %6 = vector.broadcast %cst_5 : f32 to vector<16x64xf32>
    %7 = arith.maximumf %5, %6 : vector<16x64xf32>
    %c0_6 = arith.constant 0 : index
    %c0_7 = arith.constant 0 : index
    %8 = vector.load %arg4[%c0_6, %c0_7] : memref<64x32xf32, #tpu.memory_space<vmem>>, vector<64x32xf32>
    %cst_8 = arith.constant dense<0.000000e+00> : vector<16x32xf32>
    %9 = tpu.matmul %7, %8, %cst_8 {dimension_numbers = #tpu.dot_dimension_numbers<[1], [0], [0], [1], [0, 0, 1, 1], [], []>} : vector<16x64xf32>, vector<64x32xf32>, vector<16x32xf32> -> vector<16x32xf32>
    %c0_9 = arith.constant 0 : index
    %c0_10 = arith.constant 0 : index
    %10 = vector.load %arg5[%c0_9, %c0_10] : memref<1x32xf32, #tpu.memory_space<vmem>>, vector<1x32xf32>
    %11 = vector.broadcast %10 : vector<1x32xf32> to vector<16x32xf32>
    %12 = arith.addf %9, %11 : vector<16x32xf32>
    %c0_11 = arith.constant 0 : index
    %c0_12 = arith.constant 0 : index
    %13 = vector.load %arg6[%c0_11, %c0_12] : memref<16x32xf32, #tpu.memory_space<vmem>>, vector<16x32xf32>
    tpu.vector_store %arg6[%c0_11, %c0_12], %12 {strides = array<i32>} : memref<16x32xf32, #tpu.memory_space<vmem>>, vector<16x32xf32>,
    return
  }
  func.func @transform_0(%arg0: i32) -> (i32, i32) {
    %c0_i32 = arith.constant 0 : i32
    %c0_i32_0 = arith.constant 0 : i32
    return %arg0, %c0_i32 : i32, i32
  }
  func.func @transform_1(%arg0: i32) -> (i32, i32) {
    %c0_i32 = arith.constant 0 : i32
    %c0_i32_0 = arith.constant 0 : i32
    %c0_i32_1 = arith.constant 0 : i32
    return %c0_i32, %c0_i32_0 : i32, i32
  }
  func.func @transform_2(%arg0: i32) -> (i32, i32) {
    %c0_i32 = arith.constant 0 : i32
    %c0_i32_0 = arith.constant 0 : i32
    %c0_i32_1 = arith.constant 0 : i32
    return %c0_i32, %c0_i32_0 : i32, i32
  }
  func.func @transform_3(%arg0: i32) -> (i32, i32) {
    %c0_i32 = arith.constant 0 : i32
    %c0_i32_0 = arith.constant 0 : i32
    %c0_i32_1 = arith.constant 0 : i32
    return %c0_i32, %c0_i32_0 : i32, i32
  }
  func.func @transform_4(%arg0: i32) -> (i32, i32) {
    %c0_i32 = arith.constant 0 : i32
    %c0_i32_0 = arith.constant 0 : i32
    %c0_i32_1 = arith.constant 0 : i32
    return %c0_i32, %c0_i32_0 : i32, i32
  }
  func.func @transform_5(%arg0: i32) -> (i32, i32) {
    %c0_i32 = arith.constant 0 : i32
    %c0_i32_0 = arith.constant 0 : i32
    return %arg0, %c0_i32 : i32, i32
  }
}

</mosaic_0001>

<bundles_post_ra>
// kernel: tpu_custom_call.1
= control target key start
LH: loop header
LB: loop body
LE: loop exit
PB: predicated region body
PF: predicated region fallthrough
CT: control target
= control target key end

     0   :  { %vm34_vm0 = vcmask 261120   ;;  %s398_s0 = inlined_call_operand.vmem [shape: f32[16,32], index: 0, kind: input, shape index: {}]   ;;  %s399_s1 = inlined_call_operand.vmem [shape: f32[32,64], index: 1, kind: input, shape index: {}]   ;;  %s400_s2 = inlined_call_operand.vmem [shape: f32[1,64], index: 2, kind: input, shape index: {}]   ;;  %s401_s3 = inlined_call_operand.vmem [shape: f32[64,32], index: 3, kind: input, shape index: {}]   ;;  %s402_s4 = inlined_call_operand.vmem [shape: f32[1,32], index: 4, kind: input, shape index: {}]   ;;  %s403_s5 = inlined_call_operand.hbm [shape: f32[16,32], index: 5, kind: output, shape index: {}]  }
   0x1   :  { %v26_v0 = vld [vmem:[%s399_s1 + $0x18] sm:$0xff]  ;;  %v25_v1 = vld [vmem:[%s399_s1 + $0x10] sm:$0xff]  ;;  %v21_v2 = vld [vmem:[%s398_s0] sm:$0xff] }
   0x2   :  { %255 = vmatprep.subr.mxu0 %v26_v0  ;;  %v24_v3 = vld [vmem:[%s399_s1 + $0x8] sm:$0xff]  ;;  %263 = vmatprep.mubr.msk.f32.mxu0 %vm34_vm0, %v21_v2  ;;  %v125_v4 = vld [vmem:[%s401_s3 + $0x38] sm:$0xff]  ;;  %v124_v5 = vld [vmem:[%s401_s3 + $0x30] sm:$0xff] }
   0x3   :  { %256 = vmatpush3.msra.mxu0 %v26_v0  ;;  %266 = vmatprep.subr.mxu1 %v125_v4 }
   0x4   :  { %257 = vmatprep.subr.mxu0 %v25_v1 }
   0x5   :  { %10 = vsyncpa [#allocation3], 0  ;;  %258 = vmatpush3.msra.mxu0 %v25_v1  ;;  %v23_v6 = vld [vmem:[%s399_s1] sm:$0xff]  ;;  %267 = vmatpush3.msra.mxu1 %v125_v4  ;;  %v123_v7 = vld [vmem:[%s401_s3 + $0x28] sm:$0xff]  ;;  %vm133_vm1 = vcmask 523264  }
   0x6   :  { %259 = vmatprep.subr.mxu0 %v24_v3  ;;  %268 = vmatprep.subr.mxu1 %v124_v5  ;;  %v22_v8 = vld [vmem:[%s398_s0 + $0x8] sm:$0xff]  ;;  %v122_v9 = vld [vmem:[%s401_s3 + $0x20] sm:$0xff]  ;;  %v121_v10 = vld [vmem:[%s401_s3 + $0x18] sm:$0xff] }
   0x7   :  { %260 = vmatpush3.msra.mxu0 %v24_v3  ;;  %269 = vmatpush3.msra.mxu1 %v124_v5  ;;  %v120_v11 = vld [vmem:[%s401_s3 + $0x10] sm:$0xff]  ;;  %v119_v12 = vld [vmem:[%s401_s3 + $0x8] sm:$0xff]  ;;  %v118_v13 = vld [vmem:[%s401_s3] sm:$0xff]  ;;  %s310_s3 = smov [#allocation2]  }
   0x8   :  { %261 = vmatprep.subr.mxu0 %v23_v6  ;;  %270 = vmatprep.subr.mxu1 %v123_v7  ;;  %v233_v14 = vld [vmem:[%s400_s2] ss:$0 sm:$0xff]  ;;  %s222_s23 = sshll.u32 %s310_s3, 4  ;;  %s223_s23 = int_to_ptr.vmem [resolvable:$true] %s222_s23 }
   0x9   :  { %262 = vmatpush3.msra.mxu0 %v23_v6  ;;  %271 = vmatpush3.msra.mxu1 %v123_v7  ;;  %v236_v21 = vld [vmem:[%s402_s4] ss:$0 sm:$0xff]  ;;  %s288_s2 = scalar_lea.vmem %s223_s23, 256  ;;  %p293_p1 = scmp.lt.s32.totalorder %s223_s23, %s223_s23 }
   0xa   :  { %264 = vmatmul.mubr.msk.f32.vlgmr.msra.gmra.mxu0 %vm34_vm0, %v22_v8  ;;  %272 = vmatprep.subr.mxu1 %v122_v9  ;;  %p289_p0 = scmp.ne.s32.totalorder %s223_s23, %s288_s2  ;;  %p294_p2 = scmp.lt.s32.totalorder %s288_s2, %s288_s2 }
   0xb   :  { %273 = vmatpush3.msra.mxu1 %v122_v9 }
   0xc   :  { %274 = vmatprep.subr.mxu1 %v121_v10  ;;  %p295_p3 = por %p294_p2, %p293_p1 }
   0xd   :  { %275 = vmatpush3.msra.mxu1 %v121_v10 }
   0xe   :  { %276 = vmatprep.subr.mxu1 %v120_v11  ;;  %p296_p4 = pnand %p295_p3, %p289_p0 }
   0xf   :  { %277 = vmatpush3.msra.mxu1 %v120_v11 }
  0x10   :  { %278 = vmatprep.subr.mxu1 %v119_v12 }
  0x11   :  { %279 = vmatpush3.msra.mxu1 %v119_v12 }
  0x12   :  { %280 = vmatprep.subr.mxu1 %v118_v13 }
  0x13   :  { %281 = vmatpush3.msra.mxu1 %v118_v13 }
  0xca   :  { %v265_v15 = vpop.f32.mrf.mxu0 }
  0xcb   :  { %v113_v16 = vadd.f32 %v265_v15, %v233_v14 }
  0xcc   :  { %v107_v17 = vpop.f32.mrf.mxu0 }
  0xcd   :  { %v108_v18 = vadd.f32 %v233_v14, %v107_v17  ;;  %v117_v20 = vmax.f32 %v113_v16, 0.0 }
  0xcf   :  { %v116_v19 = vmax.f32 %v108_v18, 0.0 }
  0xd1   :  { %282 = vmatprep.mubr.msk.f32.mxu1 %vm133_vm1, %v116_v19 }
  0xd2   :  { %283 = vmatmul.mubr.msk.f32.vlgmr.msra.gmra.mxu1 %vm133_vm1, %v117_v20 }
 0x192   :  { %v284_v22 = vpop.f32.mrf.mxu1 }
 0x193   :  { %v212_v23 = vadd.f32 %v284_v22, %v236_v21 }
 0x194   :  { %v206_v24 = vpop.f32.mrf.mxu1 }
 0x195   :  { %216 = vst.msk [vmem:[#allocation2 + $0x8] sm:$0xff] %vm34_vm0, %v212_v23  ;;  %v207_v25 = vadd.f32 %v236_v21, %v206_v24 }
 0x197   :  { %215 = vst.msk [vmem:[#allocation2] sm:$0xff] %vm34_vm0, %v207_v25 }
 0x198   :  { %299 = shalt.err (!%p296_p4)
}
 0x199   :  { %s311_s24 = smov 128   ;;  %s312_s4 = smov 8  }
 0x19a   :  { %228 = dma.vmem_to_hbm [thread:$0]  %s223_s23, 256, %s403_s5, [#allocation3], %s311_s24, %s311_s24, %s312_s4  }
 0x19b   :  { %308 = dma.done.wait [#allocation3], 256  }
 0x19c   :  { %309 = vsyncadd [#allocation3], 4294967040 }
 0x19d   :  { %232 = vsyncpa [#allocation3], 1 }

</bundles_post_ra>
